<compile_context>
chip_gen: v5e
topology: v5e:2x2
jax: 0.10.0
libtpu: 0.0.40
codegen_flags: <defaults>
</compile_context>

<pallas_src>
import functools

import jax
import jax.numpy as jnp
from jax import lax
from jax.experimental import pallas as pl
from jax.experimental.pallas import tpu as pltpu

MARGIN = 1.0
_PAIRWISE_EPS = 1e-6   # torch F.pairwise_distance default eps (added to the diff)
_NORM_EPS = 1e-12      # torch F.normalize default eps

# Leading "parallel" grid axis size for the loss kernels.  On v7x (2 TensorCores
# per chip) megacore shards it across cores (~2x on the HBM-bound loss); on
# v5e/v6e (1 TC) it degenerates into a two-segment serial loop at negligible cost.
_NUM_CORE_SPLITS = 2

# Per-call VMEM budget for the double-buffered feature streams of the loss kernel
# (2 streams x 2 pipeline buffers).  Must fit under the limit below with headroom
# on v7x (64 MiB physical VMEM); v5e/v6e (128 MiB) trivially accommodate it.
_VMEM_STREAM_BUDGET = 24 * 1024 * 1024
_VMEM_LIMIT_BYTES = 48 * 1024 * 1024


def _round_up(n, m):
    return ((n + m - 1) // m) * m


def _align_rows(bn, itemsize):
    # Sublane alignment for the batch tile: 8 rows for 32-bit streams,
    # 16 rows for 16-bit (sublane-packed) streams.
    m = 16 if itemsize == 2 else 8
    return max(m, (bn // m) * m)


# --------------------------------------------------------------------------- #
# forward_once: projection MLP + L2 normalize
# --------------------------------------------------------------------------- #
def _projection_kernel(x_ref, w1_ref, b1_ref, w2_ref, b2_ref, out_ref):
    # bf16 operands, f32 accumulation: one MXU pass per matmul (Precision.HIGHEST
    # on f32 would take ~6), which makes this kernel HBM-bound at large N.
    h = jnp.dot(x_ref[...], w1_ref[...],
                preferred_element_type=jnp.float32) + b1_ref[...]
    h = jnp.maximum(h, 0.0).astype(jnp.bfloat16)
    z = jnp.dot(h, w2_ref[...],
                preferred_element_type=jnp.float32) + b2_ref[...]
    # F.normalize(p=2, dim=1): z / max(||z||, eps) == z * rsqrt(max(||z||^2, eps^2));
    # rsqrt + multiply keeps the transcendental on the EUP slot (no divide pass).
    d2 = jnp.sum(z * z, axis=-1, keepdims=True)
    out_ref[...] = (z * lax.rsqrt(jnp.maximum(d2, _NORM_EPS * _NORM_EPS))
                    ).astype(out_ref.dtype)


def forward_once(enc_feat, w1, b1, w2, b2, *, block_n=None, out_dtype=jnp.float32):
    """enc_feat: (N, F) encoder features -> (N, 128) L2-normalized embeddings.

    Matmuls run bf16 x bf16 -> f32 on the MXU; bias/ReLU/normalize stay f32.
    Pass out_dtype=jnp.bfloat16 on the training path to halve embedding HBM
    traffic (the loss kernel upcasts to f32 internally).
    """
    n, f = enc_feat.shape
    h = w1.shape[1]
    e = w2.shape[1]

    if block_n is None:
        # Large M tiles amortize the ~0.35us/step pipeline overhead and fill the
        # MXU M dimension; resident weights are <0.5 MB bf16 so VMEM is no concern.
        block_n = min(1024, _round_up(n, 16))
    block_n = _align_rows(block_n, 2)          # bf16 input stream -> 16-row align

    n_pad = _round_up(n, block_n)
    if n_pad != n:
        enc_feat = jnp.pad(enc_feat, ((0, n_pad - n), (0, 0)))

    # TODO(synk): on v5e, zero-padding F 320->384 (x cols / w1 rows) would make the
    # first matmul's lane loads fully dense; skipped for simplicity.
    out = pl.pallas_call(
        _projection_kernel,
        out_shape=jax.ShapeDtypeStruct((n_pad, e), out_dtype),
        grid=(n_pad // block_n,),
        in_specs=[
            pl.BlockSpec((block_n, f), lambda i: (i, 0)),
            # Weights/biases stay resident (constant block index).
            pl.BlockSpec((f, h), lambda i: (0, 0)),
            pl.BlockSpec((1, h), lambda i: (0, 0)),
            pl.BlockSpec((h, e), lambda i: (0, 0)),
            pl.BlockSpec((1, e), lambda i: (0, 0)),
        ],
        out_specs=pl.BlockSpec((block_n, e), lambda i: (i, 0)),
        compiler_params=pltpu.CompilerParams(dimension_semantics=("parallel",)),
    )(enc_feat.astype(jnp.bfloat16),
      w1.astype(jnp.bfloat16), b1.astype(jnp.float32).reshape(1, h),
      w2.astype(jnp.bfloat16), b2.astype(jnp.float32).reshape(1, e))
    return out[:n]


def siamese_forward(x1_feat, x2_feat, params, *, block_n=None, out_dtype=jnp.float32):
    """Mirrors SiameseNet.forward on pre-computed encoder features.

    Both branches run in a single pallas_call (one launch, one weight fetch,
    2N rows of "parallel" grid work for v7x megacore to split)."""
    n = x1_feat.shape[0]
    both = jnp.concatenate([x1_feat, x2_feat], axis=0)
    emb = forward_once(both, *params, block_n=block_n, out_dtype=out_dtype)
    return emb[:n], emb[n:]


# --------------------------------------------------------------------------- #
# Contrastive loss: label*d^2 + (1-label)*clamp(margin-d, 0)^2, mean over batch
# --------------------------------------------------------------------------- #
def _contrastive_kernel(f1_ref, f2_ref, lab_ref, out_ref, acc_ref,
                        *, n_rows, rows_per_core, block_n, margin):
    c = pl.program_id(0)          # core split (parallel)
    j = pl.program_id(1)          # batch tiles within this split (arbitrary)

    @pl.when(j == 0)
    def _():
        acc_ref[...] = jnp.zeros_like(acc_ref)

    # Upcast in VMEM: features stream from HBM in their storage dtype (bf16 halves
    # the bytes read for this purely HBM-bound kernel).
    f1 = f1_ref[...].astype(jnp.float32)
    f2 = f2_ref[...].astype(jnp.float32)
    lab = lab_ref[...].astype(jnp.float32)                   # (block_n, 1)

    diff = f1 - f2 + _PAIRWISE_EPS                           # pairwise_distance eps
    d2 = jnp.sum(diff * diff, axis=-1, keepdims=True)        # (block_n, 1)
    d = jnp.sqrt(d2)
    hinge = jnp.maximum(margin - d, 0.0)
    loss = lab * d2 + (1.0 - lab) * hinge * hinge

    # Mask padded rows so they contribute 0 (global row index per core segment).
    row = (c * rows_per_core + j * block_n
           + lax.broadcasted_iota(jnp.int32, loss.shape, 0))
    loss = jnp.where(row < n_rows, loss, 0.0)

    acc_ref[...] += jnp.sum(loss, axis=0, keepdims=True)

    # Per-core partial sum (no shared accumulator across cores); wrapper sums / N.
    @pl.when(j == pl.num_programs(1) - 1)
    def _():
        out_ref[...] = acc_ref[...].reshape(out_ref.shape)


def _pick_block_n(n, d, itemsize):
    # 2 feature streams x 2 pipeline (double) buffers each, plus the label stream.
    bytes_per_row = 2 * 2 * d * itemsize + 2 * 4
    bn = _VMEM_STREAM_BUDGET // max(bytes_per_row, 1)
    # >= ~4 MB of HBM bytes per grid step keeps the ~0.35us/step overhead <10%
    # even at v7x's 3.2 TB/s; 8192 f32 rows (D=128) is ~16.8 MB double-buffered.
    bn = min(bn, 8192)
    bn = min(bn, _round_up(-(-n // _NUM_CORE_SPLITS), 16))
    return _align_rows(bn, itemsize)


def contrastive_loss(feat1, feat2, label, *, margin=MARGIN, block_n=None):
    """feat1, feat2: (N, D) f32/bf16; label: (N,) {0,1} (any dtype). Mean loss."""
    n, d = feat1.shape
    itemsize = feat1.dtype.itemsize
    if block_n is None:
        block_n = _pick_block_n(n, d, itemsize)
    block_n = _align_rows(block_n, itemsize)

    n_pad = _round_up(n, _NUM_CORE_SPLITS * block_n)
    if n_pad != n:
        pad = n_pad - n
        feat1 = jnp.pad(feat1, ((0, pad), (0, 0)))
        feat2 = jnp.pad(feat2, ((0, pad), (0, 0)))
        label = jnp.pad(label.reshape(-1), (0, pad))
    label2d = label.reshape(n_pad, 1)

    blocks_per_core = n_pad // (_NUM_CORE_SPLITS * block_n)
    rows_per_core = blocks_per_core * block_n

    kernel = functools.partial(
        _contrastive_kernel, n_rows=n, rows_per_core=rows_per_core,
        block_n=block_n, margin=float(margin))

    # TODO(synk): on v5e, pipeline_mode=pl.Buffered(3) on the two feature streams
    # can hide DMA jitter on the lower-bandwidth HBM path (plenty of VMEM there).
    out = pl.pallas_call(
        kernel,
        out_shape=jax.ShapeDtypeStruct((_NUM_CORE_SPLITS, 1, 1), jnp.float32),
        grid=(_NUM_CORE_SPLITS, blocks_per_core),
        in_specs=[
            pl.BlockSpec((block_n, d), lambda c, j: (c * blocks_per_core + j, 0)),
            pl.BlockSpec((block_n, d), lambda c, j: (c * blocks_per_core + j, 0)),
            pl.BlockSpec((block_n, 1), lambda c, j: (c * blocks_per_core + j, 0)),
        ],
        out_specs=pl.BlockSpec((1, 1, 1), lambda c, j: (c, 0, 0)),
        scratch_shapes=[pltpu.VMEM((1, 1), jnp.float32)],
        compiler_params=pltpu.CompilerParams(
            dimension_semantics=("parallel", "arbitrary"),
            vmem_limit_bytes=_VMEM_LIMIT_BYTES,
        ),
    )(feat1, feat2, label2d)
    return jnp.sum(out) / n


# --------------------------------------------------------------------------- #
# Fused training path: projection + normalize + contrastive loss in one kernel
# (embeddings never round-trip through HBM).
# --------------------------------------------------------------------------- #
def _fused_siamese_loss_kernel(x1_ref, x2_ref, lab_ref,
                               w1_ref, b1_ref, w2_ref, b2_ref,
                               out_ref, acc_ref,
                               *, n_rows, rows_per_core, block_n, margin):
    c = pl.program_id(0)
    j = pl.program_id(1)

    @pl.when(j == 0)
    def _():
        acc_ref[...] = jnp.zeros_like(acc_ref)

    def project(x):
        h = jnp.dot(x, w1_ref[...], preferred_element_type=jnp.float32) + b1_ref[...]
        h = jnp.maximum(h, 0.0).astype(jnp.bfloat16)
        z = jnp.dot(h, w2_ref[...], preferred_element_type=jnp.float32) + b2_ref[...]
        nrm2 = jnp.sum(z * z, axis=-1, keepdims=True)
        return z * lax.rsqrt(jnp.maximum(nrm2, _NORM_EPS * _NORM_EPS))

    f1 = project(x1_ref[...])
    f2 = project(x2_ref[...])
    lab = lab_ref[...].astype(jnp.float32)

    diff = f1 - f2 + _PAIRWISE_EPS
    d2 = jnp.sum(diff * diff, axis=-1, keepdims=True)
    d = jnp.sqrt(d2)
    hinge = jnp.maximum(margin - d, 0.0)
    loss = lab * d2 + (1.0 - lab) * hinge * hinge

    row = (c * rows_per_core + j * block_n
           + lax.broadcasted_iota(jnp.int32, loss.shape, 0))
    loss = jnp.where(row < n_rows, loss, 0.0)
    acc_ref[...] += jnp.sum(loss, axis=0, keepdims=True)

    @pl.when(j == pl.num_programs(1) - 1)
    def _():
        out_ref[...] = acc_ref[...].reshape(out_ref.shape)


def siamese_contrastive_loss(x1_feat, x2_feat, label, params, *,
                             margin=MARGIN, block_n=None):
    """Fused training step loss on encoder features for both branches."""
    w1, b1, w2, b2 = params
    n, f = x1_feat.shape
    h = w1.shape[1]
    e = w2.shape[1]

    if block_n is None:
        block_n = min(512, _round_up(-(-n // _NUM_CORE_SPLITS), 16))
    block_n = _align_rows(block_n, 2)          # bf16 feature streams

    n_pad = _round_up(n, _NUM_CORE_SPLITS * block_n)
    if n_pad != n:
        pad = n_pad - n
        x1_feat = jnp.pad(x1_feat, ((0, pad), (0, 0)))
        x2_feat = jnp.pad(x2_feat, ((0, pad), (0, 0)))
        label = jnp.pad(label.reshape(-1), (0, pad))
    label2d = label.reshape(n_pad, 1)

    blocks_per_core = n_pad // (_NUM_CORE_SPLITS * block_n)
    rows_per_core = blocks_per_core * block_n

    kernel = functools.partial(
        _fused_siamese_loss_kernel, n_rows=n, rows_per_core=rows_per_core,
        block_n=block_n, margin=float(margin))

    out = pl.pallas_call(
        kernel,
        out_shape=jax.ShapeDtypeStruct((_NUM_CORE_SPLITS, 1, 1), jnp.float32),
        grid=(_NUM_CORE_SPLITS, blocks_per_core),
        in_specs=[
            pl.BlockSpec((block_n, f), lambda c, j: (c * blocks_per_core + j, 0)),
            pl.BlockSpec((block_n, f), lambda c, j: (c * blocks_per_core + j, 0)),
            pl.BlockSpec((block_n, 1), lambda c, j: (c * blocks_per_core + j, 0)),
            pl.BlockSpec((f, h), lambda c, j: (0, 0)),   # resident weights
            pl.BlockSpec((1, h), lambda c, j: (0, 0)),
            pl.BlockSpec((h, e), lambda c, j: (0, 0)),
            pl.BlockSpec((1, e), lambda c, j: (0, 0)),
        ],
        out_specs=pl.BlockSpec((1, 1, 1), lambda c, j: (c, 0, 0)),
        scratch_shapes=[pltpu.VMEM((1, 1), jnp.float32)],
        compiler_params=pltpu.CompilerParams(
            dimension_semantics=("parallel", "arbitrary"),
        ),
    )(x1_feat.astype(jnp.bfloat16), x2_feat.astype(jnp.bfloat16), label2d,
      w1.astype(jnp.bfloat16), b1.astype(jnp.float32).reshape(1, h),
      w2.astype(jnp.bfloat16), b2.astype(jnp.float32).reshape(1, e))
    return jnp.sum(out) / n


# --------------------------------------------------------------------------- #
# Pure-JAX references (mirror the kernels' bf16-matmul / f32-epilogue math)
# --------------------------------------------------------------------------- #
def _forward_once_ref(x, w1, b1, w2, b2):
    h = jnp.dot(x.astype(jnp.bfloat16), w1.astype(jnp.bfloat16),
                preferred_element_type=jnp.float32) + b1.astype(jnp.float32)
    h = jnp.maximum(h, 0.0).astype(jnp.bfloat16)
    z = jnp.dot(h, w2.astype(jnp.bfloat16),
                preferred_element_type=jnp.float32) + b2.astype(jnp.float32)
    d2 = jnp.sum(z * z, axis=1, keepdims=True)
    return z * lax.rsqrt(jnp.maximum(d2, _NORM_EPS * _NORM_EPS))


def _contrastive_ref(feat1, feat2, label, margin=MARGIN):
    diff = feat1.astype(jnp.float32) - feat2.astype(jnp.float32) + _PAIRWISE_EPS
    dist = jnp.sqrt(jnp.sum(diff * diff, axis=-1))
    lab = label.astype(jnp.float32)
    hinge = jnp.maximum(margin - dist, 0.0)
    return jnp.mean(lab * dist**2 + (1.0 - lab) * hinge**2)


if __name__ == "__main__":
    key = jax.random.PRNGKey(0)
    k = jax.random.split(key, 8)

    # Small shapes consistent with the module: convnext_atto num_features = 320,
    # projection 320 -> 512 -> 128, embeddings L2-normalized over dim=1.
    batch, enc_dim, hidden, emb = 8, 320, 512, 128

    enc1 = jax.random.normal(k[0], (batch, enc_dim), dtype=jnp.float32)
    enc2 = jax.random.normal(k[1], (batch, enc_dim), dtype=jnp.float32)
    w1 = 0.05 * jax.random.normal(k[2], (enc_dim, hidden), dtype=jnp.float32)
    b1 = 0.05 * jax.random.normal(k[3], (hidden,), dtype=jnp.float32)
    w2 = 0.05 * jax.random.normal(k[4], (hidden, emb), dtype=jnp.float32)
    b2 = 0.05 * jax.random.normal(k[5], (emb,), dtype=jnp.float32)
    label = jax.random.bernoulli(k[6], 0.5, (batch,)).astype(jnp.int32)

    params = (w1, b1, w2, b2)

    # Module forward (projection + normalize), both branches in one pallas_call.
    feat1, feat2 = siamese_forward(enc1, enc2, params)
    jax.block_until_ready((feat1, feat2))
    ref1 = _forward_once_ref(enc1, *params)
    ref2 = _forward_once_ref(enc2, *params)
    assert jnp.allclose(feat1, ref1, rtol=5e-3, atol=5e-3), "forward_once mismatch (x1)"
    assert jnp.allclose(feat2, ref2, rtol=5e-3, atol=5e-3), "forward_once mismatch (x2)"

    # Contrastive loss kernel on the kernel embeddings (isolates the loss math).
    loss = contrastive_loss(feat1, feat2, label, margin=MARGIN)
    jax.block_until_ready(loss)
    ref_loss = _contrastive_ref(feat1, feat2, label, margin=MARGIN)
    assert jnp.allclose(loss, ref_loss, rtol=1e-5, atol=1e-5), (loss, ref_loss)

    # Tiled + masked + core-split path (N not a multiple of 2 * block_n).
    n2 = 300
    f1 = jax.random.normal(k[7], (n2, emb), dtype=jnp.float32)
    f2 = f1 + 0.3 * jax.random.normal(k[3], (n2, emb), dtype=jnp.float32)
    lab2 = jax.random.bernoulli(k[5], 0.5, (n2,)).astype(jnp.int32)
    loss2 = contrastive_loss(f1, f2, lab2, block_n=128)
    jax.block_until_ready(loss2)
    ref2b = _contrastive_ref(f1, f2, lab2)
    assert jnp.allclose(loss2, ref2b, rtol=1e-5, atol=1e-5), (loss2, ref2b)

    # bf16 streaming path (upcast happens inside the kernel).
    f1b, f2b = f1.astype(jnp.bfloat16), f2.astype(jnp.bfloat16)
    loss3 = contrastive_loss(f1b, f2b, lab2, block_n=128)
    jax.block_until_ready(loss3)
    ref3 = _contrastive_ref(f1b.astype(jnp.float32), f2b.astype(jnp.float32), lab2)
    assert jnp.allclose(loss3, ref3, rtol=1e-5, atol=1e-5), (loss3, ref3)

    # Fused training path: projection + normalize + loss in one kernel.
    fused = siamese_contrastive_loss(enc1, enc2, label, params, margin=MARGIN)
    jax.block_until_ready(fused)
    ref_fused = _contrastive_ref(ref1, ref2, label, margin=MARGIN)
    assert jnp.allclose(fused, ref_fused, rtol=1e-3, atol=1e-3), (fused, ref_fused)

    print("KERNEL_OK")
</pallas_src>

<mosaic_0001>
module attributes {stable_mosaic.version = 11 : i64} {
  func.func @_projection_kernel(%arg0: i32, %arg1: memref<16x320xbf16, #tpu.memory_space<vmem>>, %arg2: memref<320x512xbf16, #tpu.memory_space<vmem>>, %arg3: memref<1x512xf32, #tpu.memory_space<vmem>>, %arg4: memref<512x128xbf16, #tpu.memory_space<vmem>>, %arg5: memref<1x128xf32, #tpu.memory_space<vmem>>, %arg6: memref<16x128xf32, #tpu.memory_space<vmem>>) attributes {dimension_semantics = [#tpu.dimension_semantics<parallel>], iteration_bounds = array<i64: 1>, scalar_prefetch = 0 : i64, scratch_operands = 0 : i64, tpu.core_type = #tpu.core_type<tc>, window_params = [{transform_indices = @transform_0, window_bounds = array<i64: 16, 320>}, {pipeline_mode = #tpu.pipeline_mode<synchronous>, transform_indices = @transform_1, window_bounds = array<i64: 320, 512>}, {pipeline_mode = #tpu.pipeline_mode<synchronous>, transform_indices = @transform_2, window_bounds = array<i64: 1, 512>}, {pipeline_mode = #tpu.pipeline_mode<synchronous>, transform_indices = @transform_3, window_bounds = array<i64: 512, 128>}, {pipeline_mode = #tpu.pipeline_mode<synchronous>, transform_indices = @transform_4, window_bounds = array<i64: 1, 128>}, {transform_indices = @transform_5, window_bounds = array<i64: 16, 128>}]} {
    %c0 = arith.constant 0 : index
    %c0_0 = arith.constant 0 : index
    %0 = vector.load %arg1[%c0, %c0_0] : memref<16x320xbf16, #tpu.memory_space<vmem>>, vector<16x320xbf16>
    %c0_1 = arith.constant 0 : index
    %c0_2 = arith.constant 0 : index
    %1 = vector.load %arg2[%c0_1, %c0_2] : memref<320x512xbf16, #tpu.memory_space<vmem>>, vector<320x512xbf16>
    %cst = arith.constant dense<0.000000e+00> : vector<16x512xf32>
    %2 = tpu.matmul %0, %1, %cst {dimension_numbers = #tpu.dot_dimension_numbers<[1], [0], [0], [1], [0, 0, 1, 1], [], []>} : vector<16x320xbf16>, vector<320x512xbf16>, vector<16x512xf32> -> vector<16x512xf32>
    %c0_3 = arith.constant 0 : index
    %c0_4 = arith.constant 0 : index
    %3 = vector.load %arg3[%c0_3, %c0_4] : memref<1x512xf32, #tpu.memory_space<vmem>>, vector<1x512xf32>
    %4 = vector.broadcast %3 : vector<1x512xf32> to vector<16x512xf32>
    %5 = arith.addf %2, %4 : vector<16x512xf32>
    %cst_5 = arith.constant 0.000000e+00 : f32
    %6 = vector.broadcast %cst_5 : f32 to vector<16x512xf32>
    %7 = arith.maximumf %5, %6 : vector<16x512xf32>
    %8 = arith.truncf %7 : vector<16x512xf32> to vector<16x512xbf16>
    %c0_6 = arith.constant 0 : index
    %c0_7 = arith.constant 0 : index
    %9 = vector.load %arg4[%c0_6, %c0_7] : memref<512x128xbf16, #tpu.memory_space<vmem>>, vector<512x128xbf16>
    %cst_8 = arith.constant dense<0.000000e+00> : vector<16x128xf32>
    %10 = tpu.matmul %8, %9, %cst_8 {dimension_numbers = #tpu.dot_dimension_numbers<[1], [0], [0], [1], [0, 0, 1, 1], [], []>} : vector<16x512xbf16>, vector<512x128xbf16>, vector<16x128xf32> -> vector<16x128xf32>
    %c0_9 = arith.constant 0 : index
    %c0_10 = arith.constant 0 : index
    %11 = vector.load %arg5[%c0_9, %c0_10] : memref<1x128xf32, #tpu.memory_space<vmem>>, vector<1x128xf32>
    %12 = vector.broadcast %11 : vector<1x128xf32> to vector<16x128xf32>
    %13 = arith.addf %10, %12 : vector<16x128xf32>
    %14 = arith.mulf %13, %13 : vector<16x128xf32>
    %cst_11 = arith.constant dense<0.000000e+00> : vector<16xf32>
    %15 = vector.multi_reduction <add>, %14, %cst_11 [1] : vector<16x128xf32> to vector<16xf32>
    %16 = vector.shape_cast %15 : vector<16xf32> to vector<16x1xf32>
    %cst_12 = arith.constant 1.000000e-24 : f32
    %17 = vector.broadcast %cst_12 : f32 to vector<16x1xf32>
    %18 = arith.maximumf %16, %17 : vector<16x1xf32>
    %19 = math.rsqrt %18 : vector<16x1xf32>
    %20 = vector.broadcast %19 : vector<16x1xf32> to vector<16x128xf32>
    %21 = arith.mulf %13, %20 : vector<16x128xf32>
    %c0_13 = arith.constant 0 : index
    %c0_14 = arith.constant 0 : index
    %22 = vector.load %arg6[%c0_13, %c0_14] : memref<16x128xf32, #tpu.memory_space<vmem>>, vector<16x128xf32>
    tpu.vector_store %arg6[%c0_13, %c0_14], %21 {strides = array<i32>} : memref<16x128xf32, #tpu.memory_space<vmem>>, vector<16x128xf32>,
    return
  }
  func.func @transform_0(%arg0: i32) -> (i32, i32) {
    %c0_i32 = arith.constant 0 : i32
    %c0_i32_0 = arith.constant 0 : i32
    return %arg0, %c0_i32 : i32, i32
  }
  func.func @transform_1(%arg0: i32) -> (i32, i32) {
    %c0_i32 = arith.constant 0 : i32
    %c0_i32_0 = arith.constant 0 : i32
    %c0_i32_1 = arith.constant 0 : i32
    return %c0_i32, %c0_i32_0 : i32, i32
  }
  func.func @transform_2(%arg0: i32) -> (i32, i32) {
    %c0_i32 = arith.constant 0 : i32
    %c0_i32_0 = arith.constant 0 : i32
    %c0_i32_1 = arith.constant 0 : i32
    return %c0_i32, %c0_i32_0 : i32, i32
  }
  func.func @transform_3(%arg0: i32) -> (i32, i32) {
    %c0_i32 = arith.constant 0 : i32
    %c0_i32_0 = arith.constant 0 : i32
    %c0_i32_1 = arith.constant 0 : i32
    return %c0_i32, %c0_i32_0 : i32, i32
  }
  func.func @transform_4(%arg0: i32) -> (i32, i32) {
    %c0_i32 = arith.constant 0 : i32
    %c0_i32_0 = arith.constant 0 : i32
    %c0_i32_1 = arith.constant 0 : i32
    return %c0_i32, %c0_i32_0 : i32, i32
  }
  func.func @transform_5(%arg0: i32) -> (i32, i32) {
    %c0_i32 = arith.constant 0 : i32
    %c0_i32_0 = arith.constant 0 : i32
    return %arg0, %c0_i32 : i32, i32
  }
}

</mosaic_0001>

<bundles_post_ra>
// kernel: tpu_custom_call.1
= control target key start
LH: loop header
LB: loop body
LE: loop exit
PB: predicated region body
PF: predicated region fallthrough
CT: control target
= control target key end

     0   :  { %10 = vsyncpa [#allocation3], 0  ;;  %s1959_s0 = inlined_call_operand.hbm [shape: bf16[16,320], index: 0, kind: input, shape index: {}]   ;;  %s1960_s1 = inlined_call_operand.hbm [shape: bf16[320,512], index: 1, kind: input, shape index: {}]   ;;  %s1961_s2 = inlined_call_operand.hbm [shape: f32[1,512], index: 2, kind: input, shape index: {}]   ;;  %s1962_s3 = inlined_call_operand.hbm [shape: bf16[512,128], index: 3, kind: input, shape index: {}]   ;;  %s1963_s4 = inlined_call_operand.vmem [shape: f32[1,128], index: 4, kind: input, shape index: {}]   ;;  %s1964_s5 = inlined_call_operand.hbm [shape: f32[16,128], index: 5, kind: output, shape index: {}]  }
   0x1   :  { %11 = vsyncpa [#allocation6], 0 }
   0x2   :  { %12 = vsyncpa [#allocation9], 0  ;;  %s31_s20 = sshll.u32 %s1960_s1, 4  ;;  %s32_s20 = int_to_ptr.hbm [resolvable:$true] %s31_s20 }
   0x3   :  { %13 = vsyncpa [#allocation4], 0  ;;  %s1870_s21 = smov [#allocation5]   ;;  %s18_s25 = sshll.u32 %s1959_s0, 4  ;;  %s19_s25 = int_to_ptr.hbm [resolvable:$true] %s18_s25 }
   0x4   :  { %s33_s22 = sshll.u32 %s1870_s21, 4  ;;  %s1871_s26 = smov 256   ;;  %s34_s22 = int_to_ptr.vmem [resolvable:$true] %s33_s22 }
   0x5   :  { %s1872_s27 = smov 16   ;;  %s1873_s28 = smov [#allocation2]  }
   0x6   :  { %39 = dma.hbm_to_vmem [thread:$0]  %s32_s20, 10240, %s34_s22, [#allocation6], %s1871_s26, %s1871_s26, %s1872_s27  }
   0x7   :  { %s20_s29 = sshll.u32 %s1873_s28, 4  ;;  %s1874_s30 = smov 192   ;;  %s21_s29 = int_to_ptr.vmem [resolvable:$true] %s20_s29 }
   0x8   :  { %s1875_s6 = smov 12   ;;  %s45_s8 = sshll.u32 %s1961_s2, 4  ;;  %s46_s8 = int_to_ptr.hbm [resolvable:$true] %s45_s8 }
   0x9   :  { %26 = dma.hbm_to_vmem [thread:$0]  %s19_s25, 384, %s21_s29, [#allocation3], %s1874_s30, %s1874_s30, %s1875_s6  }
   0xa   :  { %s1876_s9 = smov [#allocation7]   ;;  %s55_s12 = sshll.u32 %s1962_s3, 4  ;;  %s56_s12 = int_to_ptr.hbm [resolvable:$true] %s55_s12 }
   0xb   :  { %s47_s10 = sshll.u32 %s1876_s9, 4  ;;  %s1877_s13 = smov [#allocation8]   ;;  %s48_s10 = int_to_ptr.vmem [resolvable:$true] %s47_s10 }
   0xc   :  { %50 = dma.hbm_to_vmem [thread:$0]  %s46_s8, 64, %s48_s10, [#allocation6]  }
   0xd   :  { %s57_s14 = sshll.u32 %s1877_s13, 4  ;;  %s1878_s15 = smov 64   ;;  %s58_s14 = int_to_ptr.vmem [resolvable:$true] %s57_s14 }
   0xe   :  { %s1879_s16 = smov 4  }
   0xf   :  { %63 = dma.hbm_to_vmem [thread:$0]  %s56_s12, 4096, %s58_s14, [#allocation9], %s1878_s15, %s1878_s15, %s1879_s16  }
  0x10   :  { %1862 = dma.done.wait [#allocation3], 384  }
  0x11   :  { %1863 = vsyncadd [#allocation3], 4294966912 }
  0x12   :  { %1864 = dma.done.wait [#allocation6], 10304  }
  0x13   :  { %1865 = vsyncadd [#allocation6], 4294956992 }
  0x14   :  { %1866 = dma.done.wait [#allocation9], 4096  }
  0x15   :  { %1867 = vsyncadd [#allocation9], 4294963200  ;;  %v1463_v0 = vld [vmem:[#allocation5 + $0x260] sm:$0xf]  ;;  %v1690_v1 = vld [vmem:[#allocation5 + $0x26c] sm:$0xf0] }
  0x16   :  { %v1640_v2 = vld [vmem:[#allocation5 + $0xe4] sm:$0xf]  ;;  %v1464_v3 = vor.u32 %v1690_v1, %v1463_v0  ;;  %v1273_v4 = vld [vmem:[#allocation5 + $0xf0] sm:$0xf0]  ;;  %v1271_v5 = vld [vmem:[#allocation5 + $0xe0] sm:$0xf] }
  0x17   :  { %v1642_v6 = vld [vmem:[#allocation5 + $0xec] sm:$0xf0]  ;;  %v1276_v7 = vor.u32 %v1640_v2, %v1273_v4  ;;  %v1399_v9 = vld [vmem:[#allocation5 + $0x1e0] sm:$0xf]  ;;  %v1636_v14 = vld [vmem:[#allocation5 + $0xc4] sm:$0xf] }
  0x18   :  { %v1272_v8 = vor.u32 %v1642_v6, %v1271_v5  ;;  %v1674_v10 = vld [vmem:[#allocation5 + $0x1ec] sm:$0xf0]  ;;  %v1447_v11 = vld [vmem:[#allocation5 + $0x240] sm:$0xf]  ;;  %628 = vmatpush.bf16.msra.mxu2 %v1464_v3  ;;  %v1257_v15 = vld [vmem:[#allocation5 + $0xd0] sm:$0xf0] }
  0x19   :  { %v1400_v12 = vor.u32 %v1674_v10, %v1399_v9  ;;  %v1686_v13 = vld [vmem:[#allocation5 + $0x24c] sm:$0xf0]  ;;  %638 = vmatpush.bf16.msra.mxu3 %v1276_v7  ;;  %v1260_v17 = vor.u32 %v1636_v14, %v1257_v15  ;;  %v1255_v18 = vld [vmem:[#allocation5 + $0xc0] sm:$0xf]  ;;  %v1632_v26 = vld [vmem:[#allocation5 + $0xa4] sm:$0xf] }
  0x1a   :  { %596 = vmatpush.bf16.msra.mxu0 %v1272_v8  ;;  %v1448_v16 = vor.u32 %v1686_v13, %v1447_v11  ;;  %v1638_v19 = vld [vmem:[#allocation5 + $0xcc] sm:$0xf0]  ;;  %v1383_v20 = vld [vmem:[#allocation5 + $0x1c0] sm:$0xf]  ;;  %v1241_v27 = vld [vmem:[#allocation5 + $0xb0] sm:$0xf0] }
  0x1b   :  { %610 = vmatpush.bf16.msra.mxu1 %v1400_v12  ;;  %v1256_v21 = vor.u32 %v1638_v19, %v1255_v18  ;;  %v1670_v22 = vld [vmem:[#allocation5 + $0x1cc] sm:$0xf0]  ;;  %v1431_v23 = vld [vmem:[#allocation5 + $0x220] sm:$0xf]  ;;  %v1244_v33 = vor.u32 %v1632_v26, %v1241_v27  ;;  %v1628_v37 = vld [vmem:[#allocation5 + $0x84] sm:$0xf] }
  0x1c   :  { %v1682_v24 = vld [vmem:[#allocation5 + $0x22c] sm:$0xf0]  ;;  %v1384_v25 = vor.u32 %v1670_v22, %v1383_v20  ;;  %v1239_v28 = vld [vmem:[#allocation5 + $0xa0] sm:$0xf]  ;;  %629 = vmatpush.bf16.msra.mxu2 %v1448_v16  ;;  %v1225_v39 = vld [vmem:[#allocation5 + $0x90] sm:$0xf0] }
  0x1d   :  { %v1432_v29 = vor.u32 %v1682_v24, %v1431_v23  ;;  %v1634_v30 = vld [vmem:[#allocation5 + $0xac] sm:$0xf0]  ;;  %v1367_v31 = vld [vmem:[#allocation5 + $0x1a0] sm:$0xf]  ;;  %639 = vmatpush.bf16.msra.mxu3 %v1260_v17  ;;  %v1672_v40 = vld [vmem:[#allocation5 + $0x1e4] sm:$0xf]  ;;  %v1228_v47 = vor.u32 %v1628_v37, %v1225_v39 }
  0x1e   :  { %v1666_v32 = vld [vmem:[#allocation5 + $0x1ac] sm:$0xf0]  ;;  %597 = vmatpush.bf16.msra.mxu0 %v1256_v21  ;;  %v1240_v34 = vor.u32 %v1634_v30, %v1239_v28  ;;  %v1415_v35 = vld [vmem:[#allocation5 + $0x200] sm:$0xf]  ;;  %v1401_v41 = vld [vmem:[#allocation5 + $0x1f0] sm:$0xf0] }
  0x1f   :  { %v1678_v36 = vld [vmem:[#allocation5 + $0x20c] sm:$0xf0]  ;;  %611 = vmatpush.bf16.msra.mxu1 %v1384_v25  ;;  %v1368_v38 = vor.u32 %v1666_v32, %v1367_v31  ;;  %v1223_v42 = vld [vmem:[#allocation5 + $0x80] sm:$0xf]  ;;  %v1404_v48 = vor.u32 %v1672_v40, %v1401_v41  ;;  %v1624_v49 = vld [vmem:[#allocation5 + $0x64] sm:$0xf] }
  0x20   :  { %v1630_v43 = vld [vmem:[#allocation5 + $0x8c] sm:$0xf0]  ;;  %v1351_v44 = vld [vmem:[#allocation5 + $0x180] sm:$0xf]  ;;  %630 = vmatpush.bf16.msra.mxu2 %v1432_v29  ;;  %v1416_v45 = vor.u32 %v1678_v36, %v1415_v35  ;;  %v1209_v50 = vld [vmem:[#allocation5 + $0x70] sm:$0xf0] }
  0x21   :  { %v1662_v46 = vld [vmem:[#allocation5 + $0x18c] sm:$0xf0]  ;;  %640 = vmatpush.bf16.msra.mxu3 %v1244_v33  ;;  %v1224_v51 = vor.u32 %v1630_v43, %v1223_v42  ;;  %v1668_v53 = vld [vmem:[#allocation5 + $0x1c4] sm:$0xf]  ;;  %v1385_v54 = vld [vmem:[#allocation5 + $0x1d0] sm:$0xf0]  ;;  %v1212_v59 = vor.u32 %v1624_v49, %v1209_v50 }
  0x22   :  { %598 = vmatpush.bf16.msra.mxu0 %v1240_v34  ;;  %v1352_v52 = vor.u32 %v1662_v46, %v1351_v44  ;;  %v1207_v55 = vld [vmem:[#allocation5 + $0x60] sm:$0xf]  ;;  %v1626_v56 = vld [vmem:[#allocation5 + $0x6c] sm:$0xf0]  ;;  %v1388_v60 = vor.u32 %v1668_v53, %v1385_v54  ;;  %v1620_v61 = vld [vmem:[#allocation5 + $0x44] sm:$0xf] }
  0x23   :  { %612 = vmatpush.bf16.msra.mxu1 %v1368_v38  ;;  %v1335_v57 = vld [vmem:[#allocation5 + $0x160] sm:$0xf]  ;;  %v1658_v58 = vld [vmem:[#allocation5 + $0x16c] sm:$0xf0]  ;;  %v1193_v62 = vld [vmem:[#allocation5 + $0x50] sm:$0xf0]  ;;  %v1208_v63 = vor.u32 %v1626_v56, %v1207_v55 }
  0x24   :  { %631 = vmatpush.bf16.msra.mxu2 %v1416_v45  ;;  %v1336_v0 = vor.u32 %v1658_v58, %v1335_v57  ;;  %v1664_v1 = vld [vmem:[#allocation5 + $0x1a4] sm:$0xf]  ;;  %v1369_v2 = vld [vmem:[#allocation5 + $0x1b0] sm:$0xf0]  ;;  %v1191_v3 = vld [vmem:[#allocation5 + $0x40] sm:$0xf]  ;;  %v1196_v9 = vor.u32 %v1620_v61, %v1193_v62 }
  0x25   :  { %641 = vmatpush.bf16.msra.mxu3 %v1228_v47  ;;  %v1622_v4 = vld [vmem:[#allocation5 + $0x4c] sm:$0xf0]  ;;  %v1319_v5 = vld [vmem:[#allocation5 + $0x140] sm:$0xf]  ;;  %v1611_v8 = vld [vmem:[#allocation2 + $0x10] sm:$0xf0]  ;;  %v1372_v10 = vor.u32 %v1664_v1, %v1369_v2 }
  0x26   :  { %599 = vmatpush.bf16.msra.mxu0 %v1224_v51  ;;  %v1654_v6 = vld [vmem:[#allocation5 + $0x14c] sm:$0xf0]  ;;  %vm592_vm0 = vcmask 523264   ;;  %v1616_v11 = vld [vmem:[#allocation5 + $0x24] sm:$0xf]  ;;  %v1192_v14 = vor.u32 %v1622_v4, %v1191_v3  ;;  %s1130_s20 = sshll.u32 %s1964_s5, 4  ;;  %s1131_s20 = int_to_ptr.hbm [resolvable:$true] %s1130_s20 }
  0x27   :  { %613 = vmatpush.bf16.msra.mxu1 %v1352_v52  ;;  %v1155_v7 = vld [vmem:[#allocation2 + $0x8] sm:$0xf]  ;;  %v1177_v12 = vld [vmem:[#allocation5 + $0x30] sm:$0xf0]  ;;  %v1320_v15 = vor.u32 %v1654_v6, %v1319_v5  ;;  %v1660_v16 = vld [vmem:[#allocation5 + $0x184] sm:$0xf] }
  0x28   :  { %652 = vmatpush.bf16.msrb.mxu2 %v1404_v48  ;;  %v1925_v13 = vor.u32 %v1611_v8, %v1155_v7  ;;  %v1353_v17 = vld [vmem:[#allocation5 + $0x190] sm:$0xf0]  ;;  %v1175_v18 = vld [vmem:[#allocation5 + $0x20] sm:$0xf]  ;;  %v1618_v19 = vld [vmem:[#allocation5 + $0x2c] sm:$0xf0]  ;;  %v1180_v23 = vor.u32 %v1616_v11, %v1177_v12 }
  0x29   :  { %642 = vmatpush.bf16.msra.mxu3 %v1212_v59  ;;  %v1303_v20 = vld [vmem:[#allocation5 + $0x120] sm:$0xf]  ;;  %v1650_v21 = vld [vmem:[#allocation5 + $0x12c] sm:$0xf0]  ;;  %v1612_v22 = vld [vmem:[#allocation5 + $0x4] sm:$0xf]  ;;  %v1356_v24 = vor.u32 %v1660_v16, %v1353_v17  ;;  %v1176_v28 = vor.u32 %v1618_v19, %v1175_v18 }
  0x2a   :  { %600 = vmatpush.bf16.msra.mxu0 %v1208_v63  ;;  %1477 = vmatmul.msk.bf16.vlgmr.msra.gmra.mxu2 %vm592_vm0, %v1925_v13  ;;  %v1161_v25 = vld [vmem:[#allocation5 + $0x10] sm:$0xf0]  ;;  %v1656_v26 = vld [vmem:[#allocation5 + $0x164] sm:$0xf]  ;;  %v1304_v29 = vor.u32 %v1650_v21, %v1303_v20  ;;  %v1159_v32 = vld [vmem:[#allocation5] sm:$0xf] }
  0x2b   :  { %614 = vmatpush.bf16.msra.mxu1 %v1336_v0  ;;  %v1337_v27 = vld [vmem:[#allocation5 + $0x170] sm:$0xf0]  ;;  %v1688_v30 = vld [vmem:[#allocation5 + $0x264] sm:$0xf]  ;;  %v1614_v33 = vld [vmem:[#allocation5 + $0xc] sm:$0xf0]  ;;  %v1164_v39 = vor.u32 %v1612_v22, %v1161_v25 }
  0x2c   :  { %653 = vmatpush.bf16.msrb.mxu2 %v1388_v60  ;;  %v1465_v31 = vld [vmem:[#allocation5 + $0x270] sm:$0xf0]  ;;  %v1147_v34 = vld [vmem:[#allocation2] sm:$0xf]  ;;  %v1287_v35 = vld [vmem:[#allocation5 + $0x100] sm:$0xf]  ;;  %v1340_v40 = vor.u32 %v1656_v26, %v1337_v27  ;;  %v1160_v45 = vor.u32 %v1614_v33, %v1159_v32 }
  0x2d   :  { %643 = vmatpush.bf16.msra.mxu3 %v1196_v9  ;;  %v1646_v36 = vld [vmem:[#allocation5 + $0x10c] sm:$0xf0]  ;;  %v1471_v37 = vld [vmem:[#allocation5 + $0x268] sm:$0xf]  ;;  %v1691_v38 = vld [vmem:[#allocation5 + $0x274] sm:$0xf0]  ;;  %v1468_v44 = vor.u32 %v1688_v30, %v1465_v31 }
  0x2e   :  { %601 = vmatpush.bf16.msra.mxu0 %v1192_v14  ;;  %v1610_v41 = vld [vmem:[#allocation2 + $0x8] sm:$0xf0]  ;;  %v1279_v42 = vld [vmem:[#allocation5 + $0xe8] sm:$0xf]  ;;  %v1643_v43 = vld [vmem:[#allocation5 + $0xf4] sm:$0xf0]  ;;  %v1288_v49 = vor.u32 %v1646_v36, %v1287_v35  ;;  %v1472_v53 = vor.u32 %v1691_v38, %v1471_v37 }
  0x2f   :  { %615 = vmatpush.bf16.msra.mxu1 %v1320_v15  ;;  %v1652_v46 = vld [vmem:[#allocation5 + $0x144] sm:$0xf]  ;;  %v1321_v47 = vld [vmem:[#allocation5 + $0x150] sm:$0xf0]  ;;  %v1609_v51 = vld [vmem:[#allocation2 + $0x4] sm:$0xf]  ;;  %v1929_v54 = vor.u32 %v1610_v41, %v1147_v34  ;;  %v1280_v55 = vor.u32 %v1643_v43, %v1279_v42 }
  0x30   :  { %654 = vmatpush.bf16.msrb.mxu2 %v1372_v10  ;;  %v1684_v48 = vld [vmem:[#allocation5 + $0x244] sm:$0xf]  ;;  %v1449_v50 = vld [vmem:[#allocation5 + $0x250] sm:$0xf0]  ;;  %v1149_v52 = vld [vmem:[#allocation2 + $0xc] sm:$0xf0]  ;;  %v1324_v58 = vor.u32 %v1652_v46, %v1321_v47 }
  0x31   :  { %644 = vmatpush.bf16.msra.mxu3 %v1180_v23  ;;  %v1455_v56 = vld [vmem:[#allocation5 + $0x248] sm:$0xf]  ;;  %v1687_v57 = vld [vmem:[#allocation5 + $0x254] sm:$0xf0]  ;;  %v1452_v61 = vor.u32 %v1684_v48, %v1449_v50  ;;  %v1931_v62 = vor.u32 %v1609_v51, %v1149_v52  ;;  %v1648_v63 = vld [vmem:[#allocation5 + $0x124] sm:$0xf] }
  0x32   :  { %602 = vmatpush.bf16.msra.mxu0 %v1176_v28  ;;  %v1263_v59 = vld [vmem:[#allocation5 + $0xc8] sm:$0xf]  ;;  %v1639_v60 = vld [vmem:[#allocation5 + $0xd4] sm:$0xf0]  ;;  %v1305_v0 = vld [vmem:[#allocation5 + $0x130] sm:$0xf0]  ;;  %v1456_v3 = vor.u32 %v1687_v57, %v1455_v56 }
  0x33   :  { %616 = vmatpush.bf16.msra.mxu1 %v1304_v29  ;;  %v1680_v1 = vld [vmem:[#allocation5 + $0x224] sm:$0xf]  ;;  %v1433_v2 = vld [vmem:[#allocation5 + $0x230] sm:$0xf0]  ;;  %v1264_v4 = vor.u32 %v1639_v60, %v1263_v59  ;;  %v1439_v5 = vld [vmem:[#allocation5 + $0x228] sm:$0xf]  ;;  %v1308_v7 = vor.u32 %v1648_v63, %v1305_v0 }
  0x34   :  { %655 = vmatpush.bf16.msrb.mxu2 %v1356_v24  ;;  %v1683_v6 = vld [vmem:[#allocation5 + $0x234] sm:$0xf0]  ;;  %v1644_v8 = vld [vmem:[#allocation5 + $0x104] sm:$0xf]  ;;  %v1247_v9 = vld [vmem:[#allocation5 + $0xa8] sm:$0xf]  ;;  %v1436_v11 = vor.u32 %v1680_v1, %v1433_v2 }
  0x35   :  { %645 = vmatpush.bf16.msra.mxu3 %v1164_v39  ;;  %v1635_v10 = vld [vmem:[#allocation5 + $0xb4] sm:$0xf0]  ;;  %v1289_v12 = vld [vmem:[#allocation5 + $0x110] sm:$0xf0]  ;;  %v1676_v14 = vld [vmem:[#allocation5 + $0x204] sm:$0xf]  ;;  %v1440_v19 = vor.u32 %v1683_v6, %v1439_v5 }
  0x36   :  { %603 = vmatpush.bf16.msra.mxu0 %v1160_v45  ;;  %v1417_v15 = vld [vmem:[#allocation5 + $0x210] sm:$0xf0]  ;;  %v1407_v16 = vld [vmem:[#allocation5 + $0x1e8] sm:$0xf]  ;;  %v1641_v17 = vld [vmem:[#allocation5 + $0xec] sm:$0xf]  ;;  %v1248_v20 = vor.u32 %v1635_v10, %v1247_v9  ;;  %v1292_v24 = vor.u32 %v1644_v8, %v1289_v12 }
  0x37   :  { %617 = vmatpush.bf16.msra.mxu1 %v1288_v49  ;;  %v1281_v18 = vld [vmem:[#allocation5 + $0xf8] sm:$0xf0]  ;;  %v1675_v21 = vld [vmem:[#allocation5 + $0x1f4] sm:$0xf0]  ;;  %v1423_v22 = vld [vmem:[#allocation5 + $0x208] sm:$0xf]  ;;  %v1420_v27 = vor.u32 %v1676_v14, %v1417_v15 }
  0x38   :  { %656 = vmatpush.bf16.msrb.mxu2 %v1340_v40  ;;  %646 = vmatmul.bf16.vlgmr.msra.gmra.mxu3 %v1929_v54  ;;  %v1679_v23 = vld [vmem:[#allocation5 + $0x214] sm:$0xf0]  ;;  %v1231_v25 = vld [vmem:[#allocation5 + $0x88] sm:$0xf]  ;;  %v1284_v28 = vor.u32 %v1641_v17, %v1281_v18  ;;  %v1673_v29 = vld [vmem:[#allocation5 + $0x1ec] sm:$0xf]  ;;  %v1408_v31 = vor.u32 %v1675_v21, %v1407_v16 }
  0x39   :  { %670 = vmatpush.bf16.msrb.mxu3 %v1468_v44  ;;  %604 = vmatmul.bf16.vlgmr.msra.gmra.mxu0 %v1929_v54  ;;  %v1631_v26 = vld [vmem:[#allocation5 + $0x94] sm:$0xf0]  ;;  %v1409_v30 = vld [vmem:[#allocation5 + $0x1f8] sm:$0xf0]  ;;  %v1637_v32 = vld [vmem:[#allocation5 + $0xcc] sm:$0xf]  ;;  %v1424_v34 = vor.u32 %v1679_v23, %v1423_v22 }
  0x3a   :  { %712 = vmatpush.bf16.msrb.mxu0 %v1472_v53  ;;  %618 = vmatmul.bf16.vlgmr.msra.gmra.mxu1 %v1931_v62  ;;  %v1265_v33 = vld [vmem:[#allocation5 + $0xd8] sm:$0xf0]  ;;  %v1232_v35 = vor.u32 %v1631_v26, %v1231_v25  ;;  %v1391_v36 = vld [vmem:[#allocation5 + $0x1c8] sm:$0xf]  ;;  %v1671_v37 = vld [vmem:[#allocation5 + $0x1d4] sm:$0xf0]  ;;  %v1412_v38 = vor.u32 %v1673_v29, %v1409_v30 }
  0x3b   :  { %680 = vmatpush.bf16.msrb.mxu1 %v1280_v55  ;;  %v1215_v39 = vld [vmem:[#allocation5 + $0x68] sm:$0xf]  ;;  %v1627_v40 = vld [vmem:[#allocation5 + $0x74] sm:$0xf0]  ;;  %v1268_v41 = vor.u32 %v1637_v32, %v1265_v33  ;;  %v1669_v42 = vld [vmem:[#allocation5 + $0x1cc] sm:$0xf]  ;;  %v1392_v44 = vor.u32 %v1671_v37, %v1391_v36 }
  0x3c   :  { %657 = vmatpush.bf16.msrb.mxu2 %v1324_v58  ;;  %v1393_v43 = vld [vmem:[#allocation5 + $0x1d8] sm:$0xf0]  ;;  %v1633_v45 = vld [vmem:[#allocation5 + $0xac] sm:$0xf]  ;;  %v1216_v47 = vor.u32 %v1627_v40, %v1215_v39  ;;  %v1375_v48 = vld [vmem:[#allocation5 + $0x1a8] sm:$0xf] }
  0x3d   :  { %671 = vmatpush.bf16.msrb.mxu3 %v1452_v61  ;;  %v1249_v46 = vld [vmem:[#allocation5 + $0xb8] sm:$0xf0]  ;;  %v1667_v49 = vld [vmem:[#allocation5 + $0x1b4] sm:$0xf0]  ;;  %v1396_v50 = vor.u32 %v1669_v42, %v1393_v43  ;;  %v1199_v51 = vld [vmem:[#allocation5 + $0x48] sm:$0xf] }
  0x3e   :  { %713 = vmatpush.bf16.msrb.mxu0 %v1456_v3  ;;  %v1623_v52 = vld [vmem:[#allocation5 + $0x54] sm:$0xf0]  ;;  %v1252_v53 = vor.u32 %v1633_v45, %v1249_v46  ;;  %v1665_v55 = vld [vmem:[#allocation5 + $0x1ac] sm:$0xf]  ;;  %v1377_v56 = vld [vmem:[#allocation5 + $0x1b8] sm:$0xf0]  ;;  %v1376_v57 = vor.u32 %v1667_v49, %v1375_v48 }
  0x3f   :  { %681 = vmatpush.bf16.msrb.mxu1 %v1264_v4  ;;  %v1629_v58 = vld [vmem:[#allocation5 + $0x8c] sm:$0xf]  ;;  %v1233_v59 = vld [vmem:[#allocation5 + $0x98] sm:$0xf0]  ;;  %v1200_v60 = vor.u32 %v1623_v52, %v1199_v51  ;;  %v1359_v61 = vld [vmem:[#allocation5 + $0x188] sm:$0xf]  ;;  %v1380_v0 = vor.u32 %v1665_v55, %v1377_v56 }
  0x40   :  { %658 = vmatpush.bf16.msrb.mxu2 %v1308_v7  ;;  %v1663_v63 = vld [vmem:[#allocation5 + $0x194] sm:$0xf0]  ;;  %v1183_v1 = vld [vmem:[#allocation5 + $0x28] sm:$0xf]  ;;  %v1236_v3 = vor.u32 %v1629_v58, %v1233_v59  ;;  %v1661_v4 = vld [vmem:[#allocation5 + $0x18c] sm:$0xf] }
  0x41   :  { %672 = vmatpush.bf16.msrb.mxu3 %v1436_v11  ;;  %v1619_v2 = vld [vmem:[#allocation5 + $0x34] sm:$0xf0]  ;;  %v1361_v5 = vld [vmem:[#allocation5 + $0x198] sm:$0xf0]  ;;  %v1360_v6 = vor.u32 %v1663_v63, %v1359_v61  ;;  %v1625_v7 = vld [vmem:[#allocation5 + $0x6c] sm:$0xf] }
  0x42   :  { %714 = vmatpush.bf16.msrb.mxu0 %v1440_v19  ;;  %v1217_v8 = vld [vmem:[#allocation5 + $0x78] sm:$0xf0]  ;;  %v1184_v9 = vor.u32 %v1619_v2, %v1183_v1  ;;  %v1343_v10 = vld [vmem:[#allocation5 + $0x168] sm:$0xf]  ;;  %v1659_v11 = vld [vmem:[#allocation5 + $0x174] sm:$0xf0]  ;;  %v1364_v14 = vor.u32 %v1661_v4, %v1361_v5 }
  0x43   :  { %682 = vmatpush.bf16.msrb.mxu1 %v1248_v20  ;;  %v1167_v12 = vld [vmem:[#allocation5 + $0x8] sm:$0xf]  ;;  %v1615_v15 = vld [vmem:[#allocation5 + $0x14] sm:$0xf0]  ;;  %v1657_v16 = vld [vmem:[#allocation5 + $0x16c] sm:$0xf]  ;;  %v1220_v17 = vor.u32 %v1625_v7, %v1217_v8  ;;  %v1344_v21 = vor.u32 %v1659_v11, %v1343_v10 }
  0x44   :  { %659 = vmatpush.bf16.msrb.mxu2 %v1292_v24  ;;  %v1345_v18 = vld [vmem:[#allocation5 + $0x178] sm:$0xf0]  ;;  %v1689_v19 = vld [vmem:[#allocation5 + $0x26c] sm:$0xf]  ;;  %v1168_v24 = vor.u32 %v1615_v15, %v1167_v12  ;;  %v1327_v25 = vld [vmem:[#allocation5 + $0x148] sm:$0xf] }
  0x45   :  { %673 = vmatpush.bf16.msrb.mxu3 %v1420_v27  ;;  %v1473_v20 = vld [vmem:[#allocation5 + $0x278] sm:$0xf0]  ;;  %v1621_v22 = vld [vmem:[#allocation5 + $0x4c] sm:$0xf]  ;;  %v1655_v26 = vld [vmem:[#allocation5 + $0x154] sm:$0xf0]  ;;  %v1348_v27 = vor.u32 %v1657_v16, %v1345_v18 }
  0x46   :  { %715 = vmatpush.bf16.msrb.mxu0 %v1424_v34  ;;  %v1201_v23 = vld [vmem:[#allocation5 + $0x58] sm:$0xf0]  ;;  %v1653_v29 = vld [vmem:[#allocation5 + $0x14c] sm:$0xf]  ;;  %v1328_v34 = vor.u32 %v1655_v26, %v1327_v25  ;;  %v1311_v37 = vld [vmem:[#allocation5 + $0x128] sm:$0xf] }
  0x47   :  { %660 = vmatmul.bf16.vlgmr.msrb.gmra.mxu2 %v1931_v62  ;;  %683 = vmatpush.bf16.msrb.mxu1 %v1232_v35  ;;  %v1204_v30 = vor.u32 %v1621_v22, %v1201_v23  ;;  %v1685_v32 = vld [vmem:[#allocation5 + $0x24c] sm:$0xf]  ;;  %v1457_v33 = vld [vmem:[#allocation5 + $0x258] sm:$0xf0]  ;;  %v1295_v49 = vld [vmem:[#allocation5 + $0x108] sm:$0xf] }
  0x48   :  { %722 = vmatpush.bf16.msra.mxu2 %v1284_v28  ;;  %1478 = vmatmul.msk.bf16.vlgmr.msrb.gmra.mxu3 %vm592_vm0, %v1925_v13  ;;  %v1476_v28 = vor.u32 %v1689_v19, %v1473_v20  ;;  %v1617_v35 = vld [vmem:[#allocation5 + $0x2c] sm:$0xf]  ;;  %v1185_v36 = vld [vmem:[#allocation5 + $0x38] sm:$0xf0]  ;;  %v1460_v40 = vor.u32 %v1685_v32, %v1457_v33  ;;  %v1696_v2 = vld [vmem:[#allocation8 + $0x20] sm:$0xff]  ;;  %s1881_s21 = smov 128  }
  0x49   :  { %694 = vmatpush.bf16.msra.mxu3 %v1408_v31  ;;  %1479 = vmatmul.msk.bf16.vlgmr.msrb.gmra.mxu0 %vm592_vm0, %v1925_v13  ;;  %v1329_v31 = vld [vmem:[#allocation5 + $0x158] sm:$0xf0]  ;;  %v1188_v42 = vor.u32 %v1617_v35, %v1185_v36  ;;  %v1645_v55 = vld [vmem:[#allocation5 + $0x10c] sm:$0xf]  ;;  %v1694_v5 = vld [vmem:[#allocation8 + $0x10] sm:$0xff]  ;;  %s1882_s22 = smov 8  }
  0x4a   :  { %736 = vmatpush.bf16.msra.mxu0 %v1412_v38  ;;  %v1651_v38 = vld [vmem:[#allocation5 + $0x134] sm:$0xf0]  ;;  %v1332_v39 = vor.u32 %v1653_v29, %v1329_v31  ;;  %v1313_v43 = vld [vmem:[#allocation5 + $0x138] sm:$0xf0]  ;;  %v1677_v58 = vld [vmem:[#allocation5 + $0x20c] sm:$0xf] }
  0x4b   :  { %684 = vmatpush.bf16.msrb.mxu1 %v1216_v47  ;;  %v1441_v45 = vld [vmem:[#allocation5 + $0x238] sm:$0xf0]  ;;  %v1312_v46 = vor.u32 %v1651_v38, %v1311_v37  ;;  %v1613_v47 = vld [vmem:[#allocation5 + $0xc] sm:$0xf]  ;;  %v1704_v8 = vld [vmem:[#allocation8 + $0x60] sm:$0xff] }
  0x4c   :  { %723 = vmatpush.bf16.msra.mxu2 %v1268_v41  ;;  %v1649_v41 = vld [vmem:[#allocation5 + $0x12c] sm:$0xf]  ;;  %v1169_v48 = vld [vmem:[#allocation5 + $0x18] sm:$0xf0]  ;;  %v1947_v10 = vld [vmem:[#allocation7] sm:$0xf] }
  0x4d   :  { %695 = vmatpush.bf16.msra.mxu3 %v1392_v44  ;;  %v1681_v44 = vld [vmem:[#allocation5 + $0x22c] sm:$0xf]  ;;  %v1316_v51 = vor.u32 %v1649_v41, %v1313_v43  ;;  %v1297_v56 = vld [vmem:[#allocation5 + $0x118] sm:$0xf0]  ;;  %v169_v12 = vperm.slane %v1947_v10, 0  ;;  %v1700_v15 = vld [vmem:[#allocation8 + $0x40] sm:$0xff] }
  0x4e   :  { %737 = vmatpush.bf16.msra.mxu0 %v1396_v50  ;;  %v1647_v50 = vld [vmem:[#allocation5 + $0x114] sm:$0xf0]  ;;  %v1444_v52 = vor.u32 %v1681_v44, %v1441_v45  ;;  %v1425_v59 = vld [vmem:[#allocation5 + $0x218] sm:$0xf0]  ;;  %v1300_v61 = vor.u32 %v1645_v55, %v1297_v56  ;;  %v1697_v1 = vld [vmem:[#allocation8 + $0x28] sm:$0xff] }
  0x4f   :  { %685 = vmatpush.bf16.msrb.mxu1 %v1200_v60  ;;  %v1699_v60 = vld [vmem:[#allocation8 + $0x38] sm:$0xff]  ;;  %v1428_v63 = vor.u32 %v1677_v58, %v1425_v59  ;;  %v1705_v7 = vld [vmem:[#allocation8 + $0x68] sm:$0xff]  ;;  %v1722_v22 = vld [vmem:[#allocation8 + $0xf0] sm:$0xff] }
  0x50   :  { %724 = vmatpush.bf16.msra.mxu2 %v1252_v53  ;;  %v1172_v53 = vor.u32 %v1613_v47, %v1169_v48  ;;  %v1707_v4 = vld [vmem:[#allocation8 + $0x78] sm:$0xff]  ;;  %v1701_v11 = vld [vmem:[#allocation8 + $0x48] sm:$0xff]  ;;  %v1712_v32 = vld [vmem:[#allocation8 + $0xa0] sm:$0xff] }
  0x51   :  { %696 = vmatpush.bf16.msra.mxu3 %v1376_v57  ;;  %v1296_v57 = vor.u32 %v1647_v50, %v1295_v49  ;;  %v1715_v16 = vld [vmem:[#allocation8 + $0xb8] sm:$0xff]  ;;  %v1713_v26 = vld [vmem:[#allocation8 + $0xa8] sm:$0xff]  ;;  %v1720_v37 = vld [vmem:[#allocation8 + $0xe0] sm:$0xff] }
  0x52   :  { %738 = vmatpush.bf16.msra.mxu0 %v1380_v0  ;;  %v1698_v0 = vld [vmem:[#allocation8 + $0x30] sm:$0xff]  ;;  %v1723_v20 = vld [vmem:[#allocation8 + $0xf8] sm:$0xff]  ;;  %v1709_v48 = vld [vmem:[#allocation8 + $0x88] sm:$0xff] }
  0x53   :  { %686 = vmatpush.bf16.msrb.mxu1 %v1184_v9  ;;  %v1702_v9 = vld [vmem:[#allocation8 + $0x50] sm:$0xff]  ;;  %v1719_v43 = vld [vmem:[#allocation8 + $0xd8] sm:$0xff]  ;;  %v1708_v56 = vld [vmem:[#allocation8 + $0x80] sm:$0xff] }
  0x54   :  { %725 = vmatpush.bf16.msra.mxu2 %v1236_v3  ;;  %v1695_v3 = vld [vmem:[#allocation8 + $0x18] sm:$0xff]  ;;  %v1710_v44 = vld [vmem:[#allocation8 + $0x90] sm:$0xff]  ;;  %v1716_v59 = vld [vmem:[#allocation8 + $0xc0] sm:$0xff] }
  0x55   :  { %697 = vmatpush.bf16.msra.mxu3 %v1360_v6  ;;  %v1693_v6 = vld [vmem:[#allocation8 + $0x8] sm:$0xff]  ;;  %v1718_v47 = vld [vmem:[#allocation8 + $0xd0] sm:$0xff] }
  0x56   :  { %739 = vmatpush.bf16.msra.mxu0 %v1364_v14 }
  0x57   :  { %687 = vmatpush.bf16.msrb.mxu1 %v1168_v24 }
  0x58   :  { %726 = vmatpush.bf16.msra.mxu2 %v1220_v17 }
  0x59   :  { %698 = vmatpush.bf16.msra.mxu3 %v1344_v21  ;;  %v1714_v21 = vld [vmem:[#allocation8 + $0xb0] sm:$0xff] }
  0x5a   :  { %740 = vmatpush.bf16.msra.mxu0 %v1348_v27  ;;  %688 = vmatmul.bf16.vlgmr.msrb.gmra.mxu1 %v1929_v54  ;;  %v1721_v27 = vld [vmem:[#allocation8 + $0xe8] sm:$0xff] }
  0x5b   :  { %754 = vmatpush.bf16.msra.mxu1 %v1476_v28 }
  0x5c   :  { %727 = vmatpush.bf16.msra.mxu2 %v1204_v30 }
  0x5d   :  { %699 = vmatpush.bf16.msra.mxu3 %v1328_v34 }
  0x5e   :  { %741 = vmatpush.bf16.msra.mxu0 %v1332_v39  ;;  %v1711_v39 = vld [vmem:[#allocation8 + $0x98] sm:$0xff] }
  0x5f   :  { %755 = vmatpush.bf16.msra.mxu1 %v1460_v40  ;;  %v170_v40 = vperm.slane %v1947_v10, 1 }
  0x60   :  { %728 = vmatpush.bf16.msra.mxu2 %v1188_v42 }
  0x61   :  { %700 = vmatpush.bf16.msra.mxu3 %v1312_v46 }
  0x62   :  { %742 = vmatpush.bf16.msra.mxu0 %v1316_v51 }
  0x63   :  { %756 = vmatpush.bf16.msra.mxu1 %v1444_v52  ;;  %v1717_v52 = vld [vmem:[#allocation8 + $0xc8] sm:$0xff] }
  0x64   :  { %729 = vmatpush.bf16.msra.mxu2 %v1172_v53 }
  0x65   :  { %701 = vmatpush.bf16.msra.mxu3 %v1296_v57 }
  0x66   :  { %743 = vmatpush.bf16.msra.mxu0 %v1300_v61 }
  0x67   :  { %730 = vmatmul.bf16.vlgmr.msra.gmra.mxu2 %v1929_v54  ;;  %757 = vmatpush.bf16.msra.mxu1 %v1428_v63  ;;  %v1706_v54 = vld [vmem:[#allocation8 + $0x70] sm:$0xff] }
  0x68   :  { %702 = vmatmul.bf16.vlgmr.msra.gmra.mxu3 %v1931_v62  ;;  %1064 = vmatpush.bf16.msrb.mxu2 %v1715_v16 }
  0x69   :  { %1036 = vmatpush.bf16.msrb.mxu3 %v1699_v60  ;;  %744 = vmatmul.bf16.vlgmr.msra.gmra.mxu0 %v1931_v62  ;;  %v1692_v62 = vld [vmem:[#allocation8] sm:$0xff] }
  0x6a   :  { %1480 = vmatmul.msk.bf16.vlgmr.msra.gmra.mxu1 %vm592_vm0, %v1925_v13  ;;  %v1703_v13 = vld [vmem:[#allocation8 + $0x58] sm:$0xff]  ;;  %1078 = vmatpush.bf16.msrb.mxu0 %v1723_v20 }
  0x6b   :  { %1050 = vmatpush.bf16.msrb.mxu1 %v1707_v4  ;;  %v172_v4 = vperm.slane %v1947_v10, 3 }
  0x6c   :  { %1065 = vmatpush.bf16.msrb.mxu2 %v1714_v21 }
  0x6d   :  { %1037 = vmatpush.bf16.msrb.mxu3 %v1698_v0 }
  0x6e   :  { %1079 = vmatpush.bf16.msrb.mxu0 %v1722_v22 }
  0x6f   :  { %1051 = vmatpush.bf16.msrb.mxu1 %v1706_v54 }
  0x70   :  { %1066 = vmatpush.bf16.msrb.mxu2 %v1713_v26 }
  0x71   :  { %1038 = vmatpush.bf16.msrb.mxu3 %v1697_v1 }
  0x72   :  { %1080 = vmatpush.bf16.msrb.mxu0 %v1721_v27 }
  0x73   :  { %1052 = vmatpush.bf16.msrb.mxu1 %v1705_v7 }
  0x74   :  { %1067 = vmatpush.bf16.msrb.mxu2 %v1712_v32 }
  0x75   :  { %1039 = vmatpush.bf16.msrb.mxu3 %v1696_v2 }
  0x76   :  { %1081 = vmatpush.bf16.msrb.mxu0 %v1720_v37 }
  0x77   :  { %1053 = vmatpush.bf16.msrb.mxu1 %v1704_v8 }
  0x78   :  { %1068 = vmatpush.bf16.msrb.mxu2 %v1711_v39 }
  0x79   :  { %1040 = vmatpush.bf16.msrb.mxu3 %v1695_v3 }
  0x7a   :  { %1082 = vmatpush.bf16.msrb.mxu0 %v1719_v43 }
  0x7b   :  { %1054 = vmatpush.bf16.msrb.mxu1 %v1703_v13 }
  0x7c   :  { %1069 = vmatpush.bf16.msrb.mxu2 %v1710_v44 }
  0x7d   :  { %1041 = vmatpush.bf16.msrb.mxu3 %v1694_v5  ;;  %v171_v5 = vperm.slane %v1947_v10, 2 }
  0x7e   :  { %1083 = vmatpush.bf16.msrb.mxu0 %v1718_v47 }
  0x7f   :  { %1055 = vmatpush.bf16.msrb.mxu1 %v1702_v9 }
  0x80   :  { %1070 = vmatpush.bf16.msrb.mxu2 %v1709_v48 }
  0x81   :  { %1042 = vmatpush.bf16.msrb.mxu3 %v1693_v6 }
  0x82   :  { %1084 = vmatpush.bf16.msrb.mxu0 %v1717_v52 }
  0x83   :  { %1056 = vmatpush.bf16.msrb.mxu1 %v1701_v11 }
  0x84   :  { %1071 = vmatpush.bf16.msrb.mxu2 %v1708_v56 }
  0x85   :  { %1043 = vmatpush.bf16.msrb.mxu3 %v1692_v62 }
  0x86   :  { %1085 = vmatpush.bf16.msrb.mxu0 %v1716_v59 }
  0x87   :  { %1057 = vmatpush.bf16.msrb.mxu1 %v1700_v15 }
  0xad   :  { %v633_v14 = vpop.f32.mrf.mxu2 }
  0xb5   :  { %v635_v25 = vpop.f32.mrf.mxu2 }
  0xb6   :  { %v605_v17 = vpop.f32.mrf.mxu0 }
  0xb7   :  { %v606_v18 = vadd.f32 %v605_v17, %v169_v12  ;;  %v619_v19 = vpop.f32.mrf.mxu1 }
  0xb9   :  { %v620_v23 = vadd.f32 %v619_v19, %v606_v18 }
  0xbb   :  { %v647_v24 = vpop.f32.mrf.mxu3  ;;  %v634_v29 = vadd.f32 %v633_v14, %v620_v23 }
  0xbc   :  { %v648_v45 = vadd.f32 %v647_v24, %v170_v40 }
  0xbd   :  { %v764_v34 = vmax.f32 %v634_v29, 0.0 }
  0xbe   :  { %v607_v28 = vpop.f32.mrf.mxu0 }
  0xbf   :  { %v608_v30 = vadd.f32 %v607_v28, %v169_v12  ;;  %v621_v31 = vpop.f32.mrf.mxu1 }
  0xc1   :  { %v622_v33 = vadd.f32 %v621_v31, %v608_v30  ;;  %v1737_v30 = vld [vmem:[%s1963_s4] ss:$0 sm:$0xff]  ;;  %s1880_s4 = smov [#allocation10]  }
  0xc2   :  { %s1128_s17 = sshll.u32 %s1880_s4, 4  ;;  %s1129_s17 = int_to_ptr.vmem [resolvable:$true] %s1128_s17 }
  0xc3   :  { %v636_v35 = vadd.f32 %v635_v25, %v622_v33  ;;  %v649_v36 = vpop.f32.mrf.mxu3 }
  0xc4   :  { %v650_v49 = vadd.f32 %v649_v36, %v170_v40 }
  0xc5   :  { %v768_v38 = vmax.f32 %v636_v35, 0.0 }
  0xc6   :  { %v717_v55 = vpop.f32.mrf.mxu0 }
  0xc7   :  { %v772_v41 = vpack.c.bf16 %v768_v38, %v764_v34 }
  0xc9   :  { %1044 = vmatmul.bf16.vlgmr.msrb.gmra.mxu3 %v772_v41 }
  0xca   :  { %v661_v42 = vpop.f32.mrf.mxu2 }
  0xcb   :  { %v675_v46 = vpop.f32.mrf.mxu3  ;;  %v662_v50 = vadd.f32 %v661_v42, %v648_v45 }
  0xcd   :  { %v676_v57 = vadd.f32 %v675_v46, %v662_v50 }
  0xce   :  { %v719_v2 = vpop.f32.mrf.mxu0 }
  0xcf   :  { %v765_v63 = vmax.f32 %v676_v57, 0.0 }
  0xd2   :  { %v663_v51 = vpop.f32.mrf.mxu2 }
  0xd3   :  { %v664_v53 = vadd.f32 %v663_v51, %v650_v49  ;;  %v677_v58 = vpop.f32.mrf.mxu3 }
  0xd5   :  { %v678_v60 = vadd.f32 %v677_v58, %v664_v53 }
  0xd7   :  { %v689_v61 = vpop.f32.mrf.mxu1  ;;  %v769_v0 = vmax.f32 %v678_v60, 0.0 }
  0xd8   :  { %v690_v13 = vadd.f32 %v689_v61, %v171_v5 }
  0xd9   :  { %v773_v1 = vpack.c.bf16 %v769_v0, %v765_v63 }
  0xdb   :  { %1058 = vmatmul.bf16.vlgmr.msrb.gmra.mxu1 %v773_v1 }
  0xdf   :  { %v691_v3 = vpop.f32.mrf.mxu1 }
  0xe0   :  { %v692_v12 = vadd.f32 %v691_v3, %v171_v5 }
  0xe6   :  { %v745_v6 = vpop.f32.mrf.mxu0 }
  0xe7   :  { %v759_v62 = vpop.f32.mrf.mxu1 }
  0xea   :  { %v731_v54 = vpop.f32.mrf.mxu2 }
  0xeb   :  { %v703_v7 = vpop.f32.mrf.mxu3  ;;  %v732_v8 = vadd.f32 %v731_v54, %v172_v4 }
  0xec   :  { %v704_v9 = vadd.f32 %v703_v7, %v690_v13 }
  0xed   :  { %v746_v11 = vadd.f32 %v745_v6, %v732_v8 }
  0xee   :  { %v718_v17 = vadd.f32 %v717_v55, %v704_v9  ;;  %v747_v19 = vpop.f32.mrf.mxu0 }
  0xef   :  { %v760_v20 = vadd.f32 %v759_v62, %v746_v11  ;;  %v761_v23 = vpop.f32.mrf.mxu1 }
  0xf0   :  { %v766_v24 = vmax.f32 %v718_v17, 0.0 }
  0xf1   :  { %v767_v26 = vmax.f32 %v760_v20, 0.0 }
  0xf2   :  { %v733_v14 = vpop.f32.mrf.mxu2 }
  0xf3   :  { %v705_v15 = vpop.f32.mrf.mxu3  ;;  %v734_v16 = vadd.f32 %v733_v14, %v172_v4 }
  0xf4   :  { %v706_v18 = vadd.f32 %v705_v15, %v692_v12 }
  0xf5   :  { %v748_v21 = vadd.f32 %v747_v19, %v734_v16 }
  0xf6   :  { %v720_v22 = vadd.f32 %v719_v2, %v706_v18 }
  0xf7   :  { %v762_v10 = vadd.f32 %v761_v23, %v748_v21 }
  0xf8   :  { %v770_v25 = vmax.f32 %v720_v22, 0.0 }
  0xf9   :  { %v771_v27 = vmax.f32 %v762_v10, 0.0 }
  0xfa   :  { %v774_v28 = vpack.c.bf16 %v770_v25, %v766_v24 }
  0xfb   :  { %v775_v29 = vpack.c.bf16 %v771_v27, %v767_v26 }
  0xfc   :  { %1072 = vmatmul.bf16.vlgmr.msrb.gmra.mxu2 %v774_v28 }
  0xfd   :  { %1086 = vmatmul.bf16.vlgmr.msrb.gmra.mxu0 %v775_v29 }
 0x14c   :  { %v1045_v31 = vpop.f32.mrf.mxu3 }
 0x14d   :  { %v1046_v33 = vadd.f32 %v1737_v30, %v1045_v31 }
 0x154   :  { %v1047_v38 = vpop.f32.mrf.mxu3 }
 0x155   :  { %v1048_v41 = vadd.f32 %v1737_v30, %v1047_v38 }
 0x158   :  { %v1059_v32 = vpop.f32.mrf.mxu1 }
 0x159   :  { %v1060_v34 = vadd.f32 %v1059_v32, %v1046_v33 }
 0x160   :  { %v1061_v40 = vpop.f32.mrf.mxu1 }
 0x161   :  { %v1062_v43 = vadd.f32 %v1061_v40, %v1048_v41 }
 0x17a   :  { %v1087_v35 = vpop.f32.mrf.mxu0 }
 0x17f   :  { %v1073_v36 = vpop.f32.mrf.mxu2 }
 0x180   :  { %v1074_v37 = vadd.f32 %v1073_v36, %v1060_v34 }
 0x182   :  { %v1088_v39 = vadd.f32 %v1087_v35, %v1074_v37  ;;  %v1089_v46 = vpop.f32.mrf.mxu0 }
 0x184   :  { %v1092_v42 = vmul.f32 %v1088_v39, %v1088_v39 }
 0x186   :  { %1094 = vadd.xlane.f32.xlu0 %v1092_v42 }
 0x187   :  { %v1075_v44 = vpop.f32.mrf.mxu2 }
 0x188   :  { %v1076_v45 = vadd.f32 %v1075_v44, %v1062_v43 }
 0x18a   :  { %v1090_v47 = vadd.f32 %v1089_v46, %v1076_v45 }
 0x18c   :  { %v1093_v48 = vmul.f32 %v1090_v47, %v1090_v47 }
 0x18e   :  { %1096 = vadd.xlane.f32.xlu0 %v1093_v48 }
 0x1f9   :  { %v1095_v49 = vpop.xlane.xlu0 %1094 }
 0x1fa   :  { %v1098_v50 = vmax.f32 %v1095_v49, 1e-24 }
 0x1fc   :  { %1738 = vrsqrt.f32 %v1098_v50  ;;  %vm1106_vm2 = vweird.f32 %v1098_v50 }
 0x201   :  { %v1097_v51 = vpop.xlane.xlu0 %1096 }
 0x202   :  { %v1739_v52 = vpop.eup %1738  ;;  %v1099_v53 = vmax.f32 %v1097_v51, 1e-24 }
 0x203   :  { %v1101_v55 = vmul.f32 %v1739_v52, %v1098_v50  ;;  %vm1107_vm1 = vweird.f32 %v1739_v52 }
 0x204   :  { %1740 = vrsqrt.f32 %v1099_v53  ;;  %vm1108_vm3 = vmor %vm1106_vm2, %vm1107_vm1  ;;  %vm1116_vm5 = vweird.f32 %v1099_v53 }
 0x205   :  { %v1102_v56 = vmul.f32 %v1739_v52, %v1101_v55 }
 0x207   :  { %v1103_v57 = vmul.f32 0.5, %v1102_v56 }
 0x209   :  { %v1104_v58 = vsub.f32 1.5, %v1103_v57 }
 0x20a   :  { %v1741_v59 = vpop.eup %1740 }
 0x20b   :  { %v1105_v60 = vmul.f32 %v1739_v52, %v1104_v58  ;;  %v1111_v61 = vmul.f32 %v1741_v59, %v1099_v53  ;;  %vm1117_vm4 = vweird.f32 %v1741_v59 }
 0x20c   :  { %vm1118_vm6 = vmor %vm1116_vm5, %vm1117_vm4 }
 0x20d   :  { %v1109_v63 = vsel %vm1108_vm3, %v1739_v52, %v1105_v60  ;;  %v1112_v0 = vmul.f32 %v1741_v59, %v1111_v61 }
 0x20e   :  { %v1120_v1 = vmul.f32 %v1109_v63, %v1088_v39 }
 0x20f   :  { %v1113_v2 = vmul.f32 0.5, %v1112_v0 }
 0x210   :  { %1122 = vst [vmem:[#allocation10] sm:$0xff] %v1120_v1 }
 0x211   :  { %v1114_v3 = vsub.f32 1.5, %v1113_v2 }
 0x213   :  { %v1115_v4 = vmul.f32 %v1741_v59, %v1114_v3 }
 0x215   :  { %v1119_v5 = vsel %vm1118_vm6, %v1741_v59, %v1115_v4 }
 0x216   :  { %v1121_v54 = vmul.f32 %v1119_v5, %v1090_v47 }
 0x218   :  { %1123 = vst [vmem:[#allocation10 + $0x8] sm:$0xff] %v1121_v54 }
 0x219   :  { %1136 = dma.vmem_to_hbm [thread:$0]  %s1129_s17, 256, %s1131_s20, [#allocation4], %s1881_s21, %s1881_s21, %s1882_s22  }
 0x21a   :  { %1868 = dma.done.wait [#allocation4], 256  }
 0x21b   :  { %1869 = vsyncadd [#allocation4], 4294967040 }
 0x21c   :  { %1141 = vsyncpa [#allocation3], 1 }
 0x21d   :  { %1142 = vsyncpa [#allocation6], 1 }
 0x21e   :  { %1143 = vsyncpa [#allocation9], 1 }
 0x21f   :  { %1144 = vsyncpa [#allocation4], 1 }

</bundles_post_ra>
